<compile_context>
chip_gen: v7x
topology: tpu7x:2x2x1
jax: 0.10.0
libtpu: 0.0.40
codegen_flags: <defaults>
</compile_context>

<pallas_src>
import functools

import jax
import jax.numpy as jnp
from jax.experimental import pallas as pl
from jax.experimental.pallas import tpu as pltpu


def _round_up(v: int, m: int) -> int:
    return (v + m - 1) // m * m


def _vmem_limit_bytes() -> int:
    # Conservative default = v7x per-TensorCore VMEM (64 MiB); query the real
    # capacity when available (128 MiB on v5e/v6e).
    cap = 64 * 1024 * 1024
    try:
        cap = int(pltpu.get_tpu_info().vmem_capacity_bytes)
    except Exception:
        pass
    # Leave headroom for compiler-internal scratch.
    return (cap * 3) // 4


def _lora_kernel(x_ref, a_ref, b_ref, o_ref, *, scaling: float):
    # Two chained MXU matmuls with f32 accumulation + fused scale on the VPU.
    # (rank << in_dim, so the second contraction and the scale are free filler
    #  in a bandwidth-bound kernel.)
    xa = jnp.dot(x_ref[...], a_ref[...], preferred_element_type=jnp.float32)
    out = jnp.dot(xa, b_ref[...], preferred_element_type=jnp.float32) * scaling
    o_ref[...] = out.astype(o_ref.dtype)


def lora_forward(x, A, B, *, alpha: float = 1.0, rank: int | None = None,
                 compute_dtype=None, tm: int | None = None,
                 tn: int | None = None):
    """Pallas implementation of LoRALayer.forward (dropout p=0 => identity).

    x: (..., in_dim), A: (in_dim, rank), B: (rank, out_dim)
    returns: (..., out_dim) in x's (compute) dtype.
    """
    in_dim, r = A.shape
    r2, out_dim = B.shape
    assert r == r2
    if rank is None:
        rank = r
    scaling = alpha / rank

    origin_shape = x.shape
    assert origin_shape[-1] == in_dim
    x_flat = x.reshape(-1, in_dim)
    if compute_dtype is not None:
        # bf16 inputs halve HBM traffic and hit the MXU's native rate;
        # accumulation stays f32 inside the kernel.
        x_flat = x_flat.astype(compute_dtype)
        A = A.astype(compute_dtype)
        B = B.astype(compute_dtype)
    out_dtype = x_flat.dtype
    itemsize = jnp.dtype(out_dtype).itemsize

    M = x_flat.shape[0]

    # Lane-dense feature dims (multiples of 128).
    in_dim_p = _round_up(in_dim, 128)
    out_128 = _round_up(out_dim, 128)

    vmem_limit = _vmem_limit_bytes()

    # N tile: whole (padded) output row when modest, else 512-wide tiles.
    if tn is None:
        tn = out_128 if out_128 <= 1024 else 512
    out_dim_p = _round_up(out_dim, tn)

    # M tile: biggest that fits the VMEM budget with double-buffered x / out
    # tiles plus the (tiny, effectively resident) A and B blocks.
    if tm is None:
        ab_bytes = (in_dim_p * rank + rank * out_dim_p) * itemsize
        budget = vmem_limit - 2 * ab_bytes - (2 << 20)
        per_row = 2 * (in_dim_p + tn) * itemsize
        tm = max(16, min(1024, budget // per_row))
    # multiple of 16 covers both f32 (8-sublane) and bf16 (16-sublane) packing.
    tm = min(tm, _round_up(M, 16))          # don't over-pad tiny batches
    tm = max(16, (tm // 16) * 16)
    M_p = _round_up(M, tm)

    x_p = jnp.pad(x_flat, ((0, M_p - M), (0, in_dim_p - in_dim)))
    A_p = jnp.pad(A, ((0, in_dim_p - in_dim), (0, 0)))
    B_p = jnp.pad(B, ((0, 0), (0, out_dim_p - out_dim)))

    kernel = functools.partial(_lora_kernel, scaling=scaling)

    cost = pl.CostEstimate(
        flops=2 * M_p * rank * (in_dim_p + out_dim_p),
        transcendentals=0,
        bytes_accessed=(M_p * in_dim_p + M_p * out_dim_p
                        + in_dim_p * rank + rank * out_dim_p) * itemsize,
    )

    out_p = pl.pallas_call(
        kernel,
        out_shape=jax.ShapeDtypeStruct((M_p, out_dim_p), out_dtype),
        grid_spec=pltpu.PrefetchScalarGridSpec(
            num_scalar_prefetch=0,
            grid=(M_p // tm, out_dim_p // tn),
            in_specs=[
                # x tile: index constant along j -> fetched once per M tile.
                pl.BlockSpec((tm, in_dim_p), lambda i, j: (i, 0)),
                # A: whole (tiny), block index constant -> never re-fetched.
                pl.BlockSpec((in_dim_p, rank), lambda i, j: (0, 0)),
                # B: tiled along the output (lane) dim.
                pl.BlockSpec((rank, tn), lambda i, j: (0, j)),
            ],
            out_specs=pl.BlockSpec((tm, tn), lambda i, j: (i, j)),
        ),
        compiler_params=pltpu.CompilerParams(
            dimension_semantics=("parallel", "parallel"),
            vmem_limit_bytes=vmem_limit,
        ),
        cost_estimate=cost,
    )(x_p, A_p, B_p)

    out = out_p[:M, :out_dim]
    return out.reshape(*origin_shape[:-1], out_dim)


def lora_reference(x, A, B, *, alpha: float = 1.0):
    rank = A.shape[1]
    scaling = alpha / rank
    origin_shape = x.shape
    x_flat = x.reshape(-1, origin_shape[-1]).astype(jnp.float32)
    out = (x_flat @ A.astype(jnp.float32) @ B.astype(jnp.float32)) * scaling
    return out.reshape(*origin_shape[:-1], -1)


if __name__ == "__main__":
    # small shapes consistent with the module: (batch, seq, hidden)
    batch, seq, in_dim, out_dim, rank, alpha = 2, 8, 32, 32, 4, 1.0

    key = jax.random.PRNGKey(0)
    kx, ka, kb = jax.random.split(key, 3)
    x = jax.random.normal(kx, (batch, seq, in_dim), dtype=jnp.float32)
    # Module inits A/B to zeros; use deterministic random params so the
    # forward is non-trivial (synthetic weights, not a checkpoint load).
    A = jax.random.normal(ka, (in_dim, rank), dtype=jnp.float32) * 0.1
    B = jax.random.normal(kb, (rank, out_dim), dtype=jnp.float32) * 0.1

    ref = lora_reference(x, A, B, alpha=alpha)

    # f32 path.
    out = jax.block_until_ready(lora_forward(x, A, B, alpha=alpha))
    assert out.shape == (batch, seq, out_dim)
    assert jnp.allclose(out, ref, atol=1e-5, rtol=1e-5)

    # bf16 compute path (halves HBM traffic; f32 accumulation in-kernel).
    out_bf16 = jax.block_until_ready(
        lora_forward(x, A, B, alpha=alpha, compute_dtype=jnp.bfloat16))
    assert out_bf16.shape == (batch, seq, out_dim)
    assert float(jnp.max(jnp.abs(out_bf16.astype(jnp.float32) - ref))) < 2e-2

    print("KERNEL_OK")
</pallas_src>

<mosaic_0001>
module attributes {stable_mosaic.version = 11 : i64} {
  func.func @_lora_kernel(%arg0: i32, %arg1: i32, %arg2: memref<16x128xf32, #tpu.memory_space<vmem>>, %arg3: memref<128x4xf32, #tpu.memory_space<vmem>>, %arg4: memref<4x128xf32, #tpu.memory_space<vmem>>, %arg5: memref<16x128xf32, #tpu.memory_space<vmem>>) attributes {dimension_semantics = [#tpu.dimension_semantics<parallel>, #tpu.dimension_semantics<parallel>], iteration_bounds = array<i64: 1, 1>, scalar_prefetch = 0 : i64, scratch_operands = 0 : i64, tpu.core_type = #tpu.core_type<tc>, window_params = [{transform_indices = @transform_0, window_bounds = array<i64: 16, 128>}, {pipeline_mode = #tpu.pipeline_mode<synchronous>, transform_indices = @transform_1, window_bounds = array<i64: 128, 4>}, {transform_indices = @transform_2, window_bounds = array<i64: 4, 128>}, {transform_indices = @transform_3, window_bounds = array<i64: 16, 128>}]} {
    %c0 = arith.constant 0 : index
    %c0_0 = arith.constant 0 : index
    %0 = vector.load %arg2[%c0, %c0_0] : memref<16x128xf32, #tpu.memory_space<vmem>>, vector<16x128xf32>
    %c0_1 = arith.constant 0 : index
    %c0_2 = arith.constant 0 : index
    %1 = vector.load %arg3[%c0_1, %c0_2] : memref<128x4xf32, #tpu.memory_space<vmem>>, vector<128x4xf32>
    %cst = arith.constant dense<0.000000e+00> : vector<16x4xf32>
    %2 = tpu.matmul %0, %1, %cst {dimension_numbers = #tpu.dot_dimension_numbers<[1], [0], [0], [1], [0, 0, 1, 1], [], []>} : vector<16x128xf32>, vector<128x4xf32>, vector<16x4xf32> -> vector<16x4xf32>
    %c0_3 = arith.constant 0 : index
    %c0_4 = arith.constant 0 : index
    %3 = vector.load %arg4[%c0_3, %c0_4] : memref<4x128xf32, #tpu.memory_space<vmem>>, vector<4x128xf32>
    %cst_5 = arith.constant dense<0.000000e+00> : vector<16x128xf32>
    %4 = tpu.matmul %2, %3, %cst_5 {dimension_numbers = #tpu.dot_dimension_numbers<[1], [0], [0], [1], [0, 0, 1, 1], [], []>} : vector<16x4xf32>, vector<4x128xf32>, vector<16x128xf32> -> vector<16x128xf32>
    %cst_6 = arith.constant 2.500000e-01 : f32
    %5 = vector.broadcast %cst_6 : f32 to vector<16x128xf32>
    %6 = arith.mulf %4, %5 : vector<16x128xf32>
    %c0_7 = arith.constant 0 : index
    %c0_8 = arith.constant 0 : index
    %7 = vector.load %arg5[%c0_7, %c0_8] : memref<16x128xf32, #tpu.memory_space<vmem>>, vector<16x128xf32>
    tpu.vector_store %arg5[%c0_7, %c0_8], %6 {strides = array<i32>} : memref<16x128xf32, #tpu.memory_space<vmem>>, vector<16x128xf32>,
    return
  }
  func.func @transform_0(%arg0: i32, %arg1: i32) -> (i32, i32) {
    %c0_i32 = arith.constant 0 : i32
    %c0_i32_0 = arith.constant 0 : i32
    return %arg0, %c0_i32 : i32, i32
  }
  func.func @transform_1(%arg0: i32, %arg1: i32) -> (i32, i32) {
    %c0_i32 = arith.constant 0 : i32
    %c0_i32_0 = arith.constant 0 : i32
    %c0_i32_1 = arith.constant 0 : i32
    return %c0_i32, %c0_i32_0 : i32, i32
  }
  func.func @transform_2(%arg0: i32, %arg1: i32) -> (i32, i32) {
    %c0_i32 = arith.constant 0 : i32
    %c0_i32_0 = arith.constant 0 : i32
    return %c0_i32, %arg1 : i32, i32
  }
  func.func @transform_3(%arg0: i32, %arg1: i32) -> (i32, i32) {
    %c0_i32 = arith.constant 0 : i32
    return %arg0, %arg1 : i32, i32
  }
}

</mosaic_0001>

<bundles_post_ra>
// kernel: tpu_custom_call.1
= control target key start
LH: loop header
LB: loop body
LE: loop exit
PB: predicated region body
PF: predicated region fallthrough
CT: control target
= control target key end

     0   :  { %s430_s0 = inlined_call_operand.vmem [shape: f32[16,128], index: 0, kind: input, shape index: {}]   ;;  %s431_s1 = inlined_call_operand.vmem [shape: f32[128,4], index: 1, kind: input, shape index: {}]   ;;  %s432_s2 = inlined_call_operand.vmem [shape: f32[4,128], index: 2, kind: input, shape index: {}]   ;;  %s433_s3 = inlined_call_operand.hbm [shape: f32[16,128], index: 3, kind: output, shape index: {}]  }
   0x1   :  { %v17_v0 = vld [vmem:[%s431_s1] sm:$0xff]  ;;  %v18_v1 = vld [vmem:[%s431_s1 + $0x8] sm:$0xff]  ;;  %v19_v2 = vld [vmem:[%s431_s1 + $0x10] sm:$0xff] }
   0x2   :  { %v279_v3 = vpack.c.bf16 %v18_v1, %v17_v0  ;;  %v20_v4 = vld [vmem:[%s431_s1 + $0x18] sm:$0xff]  ;;  %v21_v6 = vld [vmem:[%s431_s1 + $0x20] sm:$0xff]  ;;  %v22_v7 = vld [vmem:[%s431_s1 + $0x28] sm:$0xff] }
   0x3   :  { %v283_v5 = vpack.c.bf16 %v20_v4, %v19_v2  ;;  %v287_v8 = vpack.c.bf16 %v22_v7, %v21_v6  ;;  %v15_v9 = vld [vmem:[%s430_s0] sm:$0xff]  ;;  %v23_v10 = vld [vmem:[%s431_s1 + $0x30] sm:$0xff]  ;;  %v24_v11 = vld [vmem:[%s431_s1 + $0x38] sm:$0xff] }
   0x4   :  { %280 = vmatprep.subr.bf16.mxu0 %v279_v3  ;;  %271 = vmatprep.mubr.f32.mxu0 %v15_v9 }
   0x5   :  { %282 = vmatpush3.bf16.msra.mxu0 %v279_v3 }
   0x6   :  { %284 = vmatprep.subr.bf16.mxu0 %v283_v5 }
   0x7   :  { %8 = vsyncpa [#allocation3], 0  ;;  %v291_v12 = vpack.c.bf16 %v24_v11, %v23_v10  ;;  %v25_v13 = vld [vmem:[%s431_s1 + $0x40] sm:$0xff]  ;;  %v26_v14 = vld [vmem:[%s431_s1 + $0x48] sm:$0xff]  ;;  %vm116_vm0 = vcmask 1043456   ;;  %vm109_vm1 = vcmask 31744  }
   0x8   :  { %v295_v15 = vpack.c.bf16 %v26_v14, %v25_v13  ;;  %v27_v16 = vld [vmem:[%s431_s1 + $0x50] sm:$0xff]  ;;  %v28_v17 = vld [vmem:[%s431_s1 + $0x58] sm:$0xff]  ;;  %v29_v19 = vld [vmem:[%s431_s1 + $0x60] sm:$0xff] }
   0x9   :  { %286 = vmatpush3.bf16.msra.mxu0 %v283_v5  ;;  %v299_v18 = vpack.c.bf16 %v28_v17, %v27_v16  ;;  %v30_v20 = vld [vmem:[%s431_s1 + $0x68] sm:$0xff]  ;;  %v31_v22 = vld [vmem:[%s431_s1 + $0x70] sm:$0xff]  ;;  %v32_v23 = vld [vmem:[%s431_s1 + $0x78] sm:$0xff]  ;;  %s338_s1 = smov [#allocation2]  }
   0xa   :  { %288 = vmatprep.subr.bf16.mxu0 %v287_v8  ;;  %v303_v21 = vpack.c.bf16 %v30_v20, %v29_v19  ;;  %v307_v24 = vpack.c.bf16 %v32_v23, %v31_v22  ;;  %v16_v25 = vld [vmem:[%s430_s0 + $0x8] sm:$0xff]  ;;  %v108_v26 = vld [vmem:[%s432_s2] sm:$0xf]  ;;  %s204_s23 = sshll.u32 %s338_s1, 4  ;;  %s205_s23 = int_to_ptr.vmem [resolvable:$true] %s204_s23 }
   0xb   :  { %274 = vmatprep.subr.msk.mxu1 %vm116_vm0, %v108_v26  ;;  %s314_s0 = scalar_lea.vmem %s205_s23, 256  ;;  %p319_p1 = scmp.lt.s32.totalorder %s205_s23, %s205_s23 }
   0xc   :  { %275 = vmatpush3.msk.msra.mxu1 %vm116_vm0, %v108_v26  ;;  %p315_p0 = scmp.ne.s32.totalorder %s205_s23, %s314_s0  ;;  %p320_p2 = scmp.lt.s32.totalorder %s314_s0, %s314_s0 }
   0xd   :  { %290 = vmatpush3.bf16.msra.mxu0 %v287_v8 }
   0xe   :  { %292 = vmatprep.subr.bf16.mxu0 %v291_v12  ;;  %p321_p3 = por %p320_p2, %p319_p1 }
  0x10   :  { %p322_p4 = pnand %p321_p3, %p315_p0 }
  0x11   :  { %294 = vmatpush3.bf16.msra.mxu0 %v291_v12 }
  0x12   :  { %296 = vmatprep.subr.bf16.mxu0 %v295_v15 }
  0x15   :  { %298 = vmatpush3.bf16.msra.mxu0 %v295_v15 }
  0x16   :  { %300 = vmatprep.subr.bf16.mxu0 %v299_v18 }
  0x19   :  { %302 = vmatpush3.bf16.msra.mxu0 %v299_v18 }
  0x1a   :  { %304 = vmatprep.subr.bf16.mxu0 %v303_v21 }
  0x1d   :  { %306 = vmatpush3.bf16.msra.mxu0 %v303_v21 }
  0x1e   :  { %308 = vmatprep.subr.bf16.mxu0 %v307_v24 }
  0x21   :  { %310 = vmatpush3.bf16.msra.mxu0 %v307_v24 }
  0x24   :  { %272 = vmatmul.mubr.f32.vlgmr.msra.gmra.mrb[0].mxu0 %v16_v25 }
  0xf7   :  { %v273_v27 = vpop.f32.mrb[0].mxu0 }
  0xf8   :  { %v99_v28 = vpop.f32.mrb[1].mxu0 }
  0xf9   :  { %276 = vmatprep.mubr.msk.f32.mxu1 %vm109_vm1, %v99_v28 }
  0xfa   :  { %277 = vmatmul.mubr.msk.f32.vlgmr.msra.gmra.mrb[0].mxu1 %vm109_vm1, %v273_v27 }
 0x1cd   :  { %v278_v29 = vpop.f32.mrb[0].mxu1 }
 0x1ce   :  { %v196_v30 = vmul.f32 0.25, %v278_v29  ;;  %v186_v31 = vpop.f32.mrb[1].mxu1 }
 0x1cf   :  { %v195_v32 = vmul.f32 0.25, %v186_v31 }
 0x1d0   :  { %198 = vst [vmem:[#allocation2 + $0x8] sm:$0xff] %v196_v30 }
 0x1d1   :  { %197 = vst [vmem:[#allocation2] sm:$0xff] %v195_v32 }
 0x1d2   :  { %325 = shalt.err (!%p322_p4)
}
 0x1d3   :  { %s326_s25 = scalar_lea.hbm %s433_s3, 256 }
 0x1d4   :  { %p327_p5 = scmp.ne.s32.totalorder %s433_s3, %s326_s25  ;;  %p330_p6 = scmp.lt.u32.totalorder %s326_s25, %s433_s3 }
 0x1d6   :  { %p332_p7 = pnand %p330_p6, %p327_p5 }
 0x1d8   :  { %335 = shalt.err (!%p332_p7)
}
 0x1d9   :  { %s339_s30 = smov 128   ;;  %s340_s4 = smov 8  }
 0x1da   :  { %210 = dma.vmem_to_hbm [thread:$0]  %s205_s23, 256, %s433_s3, [#allocation3], %s339_s30, %s339_s30, %s340_s4  }
 0x1db   :  { %336 = dma.done.wait [#allocation3], 256  }
 0x1dc   :  { %337 = vsyncadd [#allocation3], 4294967040 }
 0x1dd   :  { %214 = vsyncpa [#allocation3], 1 }

</bundles_post_ra>
